<compile_context>
chip_gen: v6e
topology: v6e:2x2x1
jax: 0.10.0
libtpu: 0.0.40
codegen_flags: <defaults>
</compile_context>

<pallas_src>
import functools
import math

import jax
import jax.numpy as jnp
from jax.experimental import pallas as pl
from jax.experimental.pallas import tpu as pltpu


def _vmem_limit_bytes():
    """Per-generation VMEM request: never ask for the full physical VMEM
    (v7x has only 64 MiB); leave ~25% headroom for compiler scratch."""
    try:
        cap = pltpu.get_tpu_info().vmem_capacity_bytes
    except Exception:
        cap = 128 * 1024 * 1024
    return int(min(64 * 1024 * 1024, cap * 3 // 4))


def _layernorm(x, gamma, beta, eps=1e-5):
    mu = jnp.mean(x, axis=-1, keepdims=True)
    var = jnp.mean((x - mu) ** 2, axis=-1, keepdims=True)
    return (x - mu) * jax.lax.rsqrt(var + eps) * gamma + beta


# --------------------------------------------------------------------------
# K/V prologue: project the encoder once per (layer, batch).
# --------------------------------------------------------------------------
def _kv_proj_kernel(enc_ref, wk_ref, bk_ref, wv_ref, bv_ref, k_ref, v_ref):
    e = enc_ref[...]                                        # (Nk, D) bf16
    k = jnp.dot(e, wk_ref[...], preferred_element_type=jnp.float32) + bk_ref[...]
    v = jnp.dot(e, wv_ref[...], preferred_element_type=jnp.float32) + bv_ref[...]
    k_ref[...] = k.astype(k_ref.dtype)
    v_ref[...] = v.astype(v_ref.dtype)


def _kv_projection(enc_bf16, wk, bk, wv, bv):
    L, D, _ = wk.shape
    B, Nk, _ = enc_bf16.shape
    kv_shape = jax.ShapeDtypeStruct((L, B, Nk, D), jnp.bfloat16)
    wspec = pl.BlockSpec((None, D, D), lambda l, b: (l, 0, 0))
    bspec = pl.BlockSpec((None, 1, D), lambda l, b: (l, 0, 0))
    kv_spec = pl.BlockSpec((None, None, Nk, D), lambda l, b: (l, b, 0, 0))
    return pl.pallas_call(
        _kv_proj_kernel,
        out_shape=(kv_shape, kv_shape),
        grid=(L, B),
        in_specs=[pl.BlockSpec((None, Nk, D), lambda l, b: (b, 0, 0)),
                  wspec, bspec, wspec, bspec],
        out_specs=(kv_spec, kv_spec),
        compiler_params=pltpu.CompilerParams(
            dimension_semantics=("parallel", "parallel"),
            vmem_limit_bytes=_vmem_limit_bytes()),
    )(enc_bf16, wk, bk, wv, bv)


# --------------------------------------------------------------------------
# Main stacked cross-attention kernel.
# --------------------------------------------------------------------------
def _xattn_stack_kernel(dec_ref, k_ref, v_ref,
                        wq_ref, bq_ref, wo_ref, bo_ref,
                        g1_ref, be1_ref,
                        w1_ref, b1_ref, w2_ref, b2_ref,
                        g2_ref, be2_ref,
                        out_ref, carry_ref, *, n_heads):
    layer = pl.program_id(2)
    n_layers = pl.num_programs(2)

    # Layer 0: load the decoder tile into the resident f32 carry.  Later
    # layers read the carry (activations never round-trip HBM per layer).
    @pl.when(layer == 0)
    def _():
        carry_ref[...] = dec_ref[...].astype(jnp.float32)

    x = carry_ref[...]                                      # (TQ, D) f32
    tq, d = x.shape
    dh = d // n_heads
    xb = x.astype(jnp.bfloat16)                             # cast once, reuse

    # --- Q projection: one full-width (TQ,D)x(D,D) MXU matmul.
    # 1/sqrt(dh) is already folded into wq/bq.
    q = jnp.dot(xb, wq_ref[...], preferred_element_type=jnp.float32) + bq_ref[...]
    qb = q.astype(jnp.bfloat16)                             # (TQ, D)

    k = k_ref[...]                                          # (Nk, D) bf16
    v = v_ref[...]                                          # (Nk, D) bf16

    # --- Per-head scaled-dot-product attention (contraction dh is inherent).
    ctx_parts = []
    for h in range(n_heads):
        lo, hi = h * dh, (h + 1) * dh
        qh = qb[:, lo:hi]                                   # (TQ, dh) bf16
        kh = k[:, lo:hi]                                    # (Nk, dh) bf16
        vh = v[:, lo:hi]                                    # (Nk, dh) bf16
        # s = qh @ kh^T without an explicit transpose (rhs-contracted dot).
        s = jax.lax.dot_general(qh, kh, (((1,), (1,)), ((), ())),
                                preferred_element_type=jnp.float32)  # (TQ, Nk)
        s = s - jnp.max(s, axis=-1, keepdims=True)
        p = jnp.exp(s)
        p = p * pl.reciprocal(jnp.sum(p, axis=-1, keepdims=True), approx=True)
        ctx_parts.append(jnp.dot(p.astype(jnp.bfloat16), vh,
                                 preferred_element_type=jnp.float32))  # (TQ, dh)

    # Lane-dense context, then one full-width output projection.
    ctx = jnp.concatenate(ctx_parts, axis=-1).astype(jnp.bfloat16)     # (TQ, D)
    attn = jnp.dot(ctx, wo_ref[...],
                   preferred_element_type=jnp.float32) + bo_ref[...]   # (TQ, D)

    # --- Residual 1 + LayerNorm (post-norm).
    h1 = _layernorm(x + attn, g1_ref[...], be1_ref[...])

    # --- FFNN: Linear(D,4D) -> ReLU -> Linear(4D,D).
    f = jnp.dot(h1.astype(jnp.bfloat16), w1_ref[...],
                preferred_element_type=jnp.float32) + b1_ref[...]
    f = jnp.maximum(f, 0.0)
    f = jnp.dot(f.astype(jnp.bfloat16), w2_ref[...],
                preferred_element_type=jnp.float32) + b2_ref[...]

    # --- Residual 2 + LayerNorm.
    h2 = _layernorm(h1 + f, g2_ref[...], be2_ref[...])

    carry_ref[...] = h2

    @pl.when(layer == n_layers - 1)
    def _():
        out_ref[...] = h2.astype(out_ref.dtype)


def _prep_stacked_params(layer_params, n_heads):
    """Stack per-layer params with a leading layer axis; cast matmul weights
    to bf16; fold 1/sqrt(d_head) into wq/bq."""
    def stack(name):
        return jnp.stack([p[name] for p in layer_params], axis=0)

    wq = stack("wq")
    D = wq.shape[-1]
    dh = D // n_heads
    scale = 1.0 / math.sqrt(dh)

    return dict(
        wq=(wq * scale).astype(jnp.bfloat16), bq=stack("bq") * scale,
        wk=stack("wk").astype(jnp.bfloat16), bk=stack("bk"),
        wv=stack("wv").astype(jnp.bfloat16), bv=stack("bv"),
        wo=stack("wo").astype(jnp.bfloat16), bo=stack("bo"),
        g1=stack("g1"), be1=stack("be1"),
        w1=stack("w1").astype(jnp.bfloat16), b1=stack("b1"),
        w2=stack("w2").astype(jnp.bfloat16), b2=stack("b2"),
        g2=stack("g2"), be2=stack("be2"),
    )


def cross_attention_stack(dec, enc, layer_params, n_heads, tile_q=None):
    """Fused CrossAttentionStack.  dec: (B, Nq, D), enc: (B, Nk, D)."""
    B, Nq, D = dec.shape
    _, Nk, _ = enc.shape
    L = len(layer_params)
    assert D % n_heads == 0

    params = _prep_stacked_params(layer_params, n_heads)

    # Prologue: encoder K/V once per (layer, batch), bf16 in / bf16 out.
    enc_bf16 = enc.astype(jnp.bfloat16)
    k_all, v_all = _kv_projection(enc_bf16, params["wk"], params["bk"],
                                  params["wv"], params["bv"])

    # q-tile selection: larger tiles => weights streamed from HBM fewer times.
    if tile_q is None:
        if Nq <= 256:
            tile_q = Nq
        elif Nq % 256 == 0:
            tile_q = 256
        elif Nq % 128 == 0:
            tile_q = 128
        else:
            tile_q = Nq
    if Nq % tile_q != 0:
        tile_q = Nq
    n_qt = Nq // tile_q

    order = ["wq", "bq", "wo", "bo", "g1", "be1",
             "w1", "b1", "w2", "b2", "g2", "be2"]
    weights = [params[name] for name in order]

    def wspec(arr):
        n_rest = arr.ndim - 1
        return pl.BlockSpec((None,) + arr.shape[1:],
                            lambda b, qi, l, _n=n_rest: (l,) + (0,) * _n)

    kv_spec = pl.BlockSpec((None, None, Nk, D), lambda b, qi, l: (l, b, 0, 0))
    in_specs = [
        pl.BlockSpec((None, tile_q, D), lambda b, qi, l: (b, qi, 0)),  # dec
        kv_spec,                                                       # K
        kv_spec,                                                       # V
    ] + [wspec(w) for w in weights]

    out_spec = pl.BlockSpec((None, tile_q, D), lambda b, qi, l: (b, qi, 0))

    kernel = functools.partial(_xattn_stack_kernel, n_heads=n_heads)

    return pl.pallas_call(
        kernel,
        out_shape=jax.ShapeDtypeStruct((B, Nq, D), dec.dtype),
        grid=(B, n_qt, L),
        in_specs=in_specs,
        out_specs=out_spec,
        scratch_shapes=[pltpu.VMEM((tile_q, D), jnp.float32)],  # layer carry
        compiler_params=pltpu.CompilerParams(
            dimension_semantics=("parallel", "parallel", "arbitrary"),
            vmem_limit_bytes=_vmem_limit_bytes()),
    )(dec, k_all, v_all, *weights)


def init_layer_params(key, d_embed, d_ff):
    ks = jax.random.split(key, 12)

    def lin(kw, kb, din, dout):
        w = (jax.random.normal(kw, (din, dout), jnp.float32)
             / jnp.sqrt(jnp.float32(din)))
        b = jax.random.normal(kb, (1, dout), jnp.float32) * 0.01
        return w, b

    wq, bq = lin(ks[0], ks[1], d_embed, d_embed)
    wk, bk = lin(ks[2], ks[3], d_embed, d_embed)
    wv, bv = lin(ks[4], ks[5], d_embed, d_embed)
    wo, bo = lin(ks[6], ks[7], d_embed, d_embed)
    w1, b1 = lin(ks[8], ks[9], d_embed, d_ff)
    w2, b2 = lin(ks[10], ks[11], d_ff, d_embed)
    ones = jnp.ones((1, d_embed), jnp.float32)
    zeros = jnp.zeros((1, d_embed), jnp.float32)
    return dict(wq=wq, bq=bq, wk=wk, bk=bk, wv=wv, bv=bv, wo=wo, bo=bo,
                g1=ones, be1=zeros, w1=w1, b1=b1, w2=w2, b2=b2,
                g2=ones, be2=zeros)


if __name__ == "__main__":
    n_layers = 2
    B, Nq, Nk, D, H = 2, 8, 16, 32, 4
    D_ff = 4 * D

    key = jax.random.PRNGKey(0)
    k_dec, k_enc, k_params = jax.random.split(key, 3)

    decoder_input = jax.random.normal(k_dec, (B, Nq, D), jnp.float32)
    encoder_output = jax.random.normal(k_enc, (B, Nk, D), jnp.float32)

    layer_keys = jax.random.split(k_params, n_layers)
    layer_params = [init_layer_params(layer_keys[i], D, D_ff)
                    for i in range(n_layers)]

    out = cross_attention_stack(decoder_input, encoder_output,
                                layer_params, n_heads=H)
    out = jax.block_until_ready(out)
    assert out.shape == (B, Nq, D), out.shape
    assert bool(jnp.all(jnp.isfinite(out)))
    print("KERNEL_OK")
</pallas_src>

<mosaic_0001>
module attributes {stable_mosaic.version = 11 : i64} {
  func.func @_kv_proj_kernel(%arg0: i32, %arg1: i32, %arg2: memref<1x16x32xbf16, #tpu.memory_space<vmem>>, %arg3: memref<1x32x32xbf16, #tpu.memory_space<vmem>>, %arg4: memref<1x1x32xf32, #tpu.memory_space<vmem>>, %arg5: memref<1x32x32xbf16, #tpu.memory_space<vmem>>, %arg6: memref<1x1x32xf32, #tpu.memory_space<vmem>>, %arg7: memref<1x1x16x32xbf16, #tpu.memory_space<vmem>>, %arg8: memref<1x1x16x32xbf16, #tpu.memory_space<vmem>>) attributes {dimension_semantics = [#tpu.dimension_semantics<parallel>, #tpu.dimension_semantics<parallel>], iteration_bounds = array<i64: 2, 2>, scalar_prefetch = 0 : i64, scratch_operands = 0 : i64, tpu.core_type = #tpu.core_type<tc>, window_params = [{transform_indices = @transform_0, window_bounds = array<i64: 1, 16, 32>}, {transform_indices = @transform_1, window_bounds = array<i64: 1, 32, 32>}, {transform_indices = @transform_2, window_bounds = array<i64: 1, 1, 32>}, {transform_indices = @transform_3, window_bounds = array<i64: 1, 32, 32>}, {transform_indices = @transform_4, window_bounds = array<i64: 1, 1, 32>}, {transform_indices = @transform_5, window_bounds = array<i64: 1, 1, 16, 32>}, {transform_indices = @transform_6, window_bounds = array<i64: 1, 1, 16, 32>}]} {
    %c0 = arith.constant 0 : index
    %c0_0 = arith.constant 0 : index
    %c0_1 = arith.constant 0 : index
    %0 = vector.load %arg2[%c0, %c0_0, %c0_1] : memref<1x16x32xbf16, #tpu.memory_space<vmem>>, vector<1x16x32xbf16>
    %1 = vector.shape_cast %0 : vector<1x16x32xbf16> to vector<16x32xbf16>
    %c0_2 = arith.constant 0 : index
    %c0_3 = arith.constant 0 : index
    %c0_4 = arith.constant 0 : index
    %2 = vector.load %arg3[%c0_2, %c0_3, %c0_4] : memref<1x32x32xbf16, #tpu.memory_space<vmem>>, vector<1x32x32xbf16>
    %3 = vector.shape_cast %2 : vector<1x32x32xbf16> to vector<32x32xbf16>
    %cst = arith.constant dense<0.000000e+00> : vector<16x32xf32>
    %4 = tpu.matmul %1, %3, %cst {dimension_numbers = #tpu.dot_dimension_numbers<[1], [0], [0], [1], [0, 0, 1, 1], [], []>} : vector<16x32xbf16>, vector<32x32xbf16>, vector<16x32xf32> -> vector<16x32xf32>
    %c0_5 = arith.constant 0 : index
    %c0_6 = arith.constant 0 : index
    %c0_7 = arith.constant 0 : index
    %5 = vector.load %arg4[%c0_5, %c0_6, %c0_7] : memref<1x1x32xf32, #tpu.memory_space<vmem>>, vector<1x1x32xf32>
    %6 = vector.shape_cast %5 : vector<1x1x32xf32> to vector<1x32xf32>
    %7 = vector.broadcast %6 : vector<1x32xf32> to vector<16x32xf32>
    %8 = arith.addf %4, %7 : vector<16x32xf32>
    %c0_8 = arith.constant 0 : index
    %c0_9 = arith.constant 0 : index
    %c0_10 = arith.constant 0 : index
    %9 = vector.load %arg5[%c0_8, %c0_9, %c0_10] : memref<1x32x32xbf16, #tpu.memory_space<vmem>>, vector<1x32x32xbf16>
    %10 = vector.shape_cast %9 : vector<1x32x32xbf16> to vector<32x32xbf16>
    %cst_11 = arith.constant dense<0.000000e+00> : vector<16x32xf32>
    %11 = tpu.matmul %1, %10, %cst_11 {dimension_numbers = #tpu.dot_dimension_numbers<[1], [0], [0], [1], [0, 0, 1, 1], [], []>} : vector<16x32xbf16>, vector<32x32xbf16>, vector<16x32xf32> -> vector<16x32xf32>
    %c0_12 = arith.constant 0 : index
    %c0_13 = arith.constant 0 : index
    %c0_14 = arith.constant 0 : index
    %12 = vector.load %arg6[%c0_12, %c0_13, %c0_14] : memref<1x1x32xf32, #tpu.memory_space<vmem>>, vector<1x1x32xf32>
    %13 = vector.shape_cast %12 : vector<1x1x32xf32> to vector<1x32xf32>
    %14 = vector.broadcast %13 : vector<1x32xf32> to vector<16x32xf32>
    %15 = arith.addf %11, %14 : vector<16x32xf32>
    %16 = arith.truncf %8 : vector<16x32xf32> to vector<16x32xbf16>
    %c0_15 = arith.constant 0 : index
    %c0_16 = arith.constant 0 : index
    %c0_17 = arith.constant 0 : index
    %c0_18 = arith.constant 0 : index
    %17 = vector.load %arg7[%c0_15, %c0_16, %c0_17, %c0_18] : memref<1x1x16x32xbf16, #tpu.memory_space<vmem>>, vector<1x1x16x32xbf16>
    %18 = vector.shape_cast %17 : vector<1x1x16x32xbf16> to vector<16x32xbf16>
    %19 = vector.shape_cast %16 : vector<16x32xbf16> to vector<1x1x16x32xbf16>
    tpu.vector_store %arg7[%c0_15, %c0_16, %c0_17, %c0_18], %19 {strides = array<i32>} : memref<1x1x16x32xbf16, #tpu.memory_space<vmem>>, vector<1x1x16x32xbf16>,
    %20 = arith.truncf %15 : vector<16x32xf32> to vector<16x32xbf16>
    %c0_19 = arith.constant 0 : index
    %c0_20 = arith.constant 0 : index
    %c0_21 = arith.constant 0 : index
    %c0_22 = arith.constant 0 : index
    %21 = vector.load %arg8[%c0_19, %c0_20, %c0_21, %c0_22] : memref<1x1x16x32xbf16, #tpu.memory_space<vmem>>, vector<1x1x16x32xbf16>
    %22 = vector.shape_cast %21 : vector<1x1x16x32xbf16> to vector<16x32xbf16>
    %23 = vector.shape_cast %20 : vector<16x32xbf16> to vector<1x1x16x32xbf16>
    tpu.vector_store %arg8[%c0_19, %c0_20, %c0_21, %c0_22], %23 {strides = array<i32>} : memref<1x1x16x32xbf16, #tpu.memory_space<vmem>>, vector<1x1x16x32xbf16>,
    return
  }
  func.func @transform_0(%arg0: i32, %arg1: i32) -> (i32, i32, i32) {
    %c0_i32 = arith.constant 0 : i32
    %c0_i32_0 = arith.constant 0 : i32
    %c0_i32_1 = arith.constant 0 : i32
    return %arg1, %c0_i32, %c0_i32_0 : i32, i32, i32
  }
  func.func @transform_1(%arg0: i32, %arg1: i32) -> (i32, i32, i32) {
    %c0_i32 = arith.constant 0 : i32
    %c0_i32_0 = arith.constant 0 : i32
    %c0_i32_1 = arith.constant 0 : i32
    return %arg0, %c0_i32, %c0_i32_0 : i32, i32, i32
  }
  func.func @transform_2(%arg0: i32, %arg1: i32) -> (i32, i32, i32) {
    %c0_i32 = arith.constant 0 : i32
    %c0_i32_0 = arith.constant 0 : i32
    %c0_i32_1 = arith.constant 0 : i32
    return %arg0, %c0_i32, %c0_i32_0 : i32, i32, i32
  }
  func.func @transform_3(%arg0: i32, %arg1: i32) -> (i32, i32, i32) {
    %c0_i32 = arith.constant 0 : i32
    %c0_i32_0 = arith.constant 0 : i32
    %c0_i32_1 = arith.constant 0 : i32
    return %arg0, %c0_i32, %c0_i32_0 : i32, i32, i32
  }
  func.func @transform_4(%arg0: i32, %arg1: i32) -> (i32, i32, i32) {
    %c0_i32 = arith.constant 0 : i32
    %c0_i32_0 = arith.constant 0 : i32
    %c0_i32_1 = arith.constant 0 : i32
    return %arg0, %c0_i32, %c0_i32_0 : i32, i32, i32
  }
  func.func @transform_5(%arg0: i32, %arg1: i32) -> (i32, i32, i32, i32) {
    %c0_i32 = arith.constant 0 : i32
    %c0_i32_0 = arith.constant 0 : i32
    %c0_i32_1 = arith.constant 0 : i32
    return %arg0, %arg1, %c0_i32, %c0_i32_0 : i32, i32, i32, i32
  }
  func.func @transform_6(%arg0: i32, %arg1: i32) -> (i32, i32, i32, i32) {
    %c0_i32 = arith.constant 0 : i32
    %c0_i32_0 = arith.constant 0 : i32
    %c0_i32_1 = arith.constant 0 : i32
    return %arg0, %arg1, %c0_i32, %c0_i32_0 : i32, i32, i32, i32
  }
}

</mosaic_0001>

<bundles_post_ra>
// kernel: tpu_custom_call.1
= control target key start
LH: loop header
LB: loop body
LE: loop exit
PB: predicated region body
PF: predicated region fallthrough
CT: control target
= control target key end

     0   :  { %s1688_s0 = inlined_call_operand.hbm [shape: bf16[2,16,32], index: 0, kind: input, shape index: {}]   ;;  %s1689_s1 = inlined_call_operand.hbm [shape: bf16[2,32,32], index: 1, kind: input, shape index: {}]   ;;  %s1690_s2 = inlined_call_operand.vmem [shape: f32[2,1,32], index: 2, kind: input, shape index: {}]   ;;  %s1691_s3 = inlined_call_operand.hbm [shape: bf16[2,32,32], index: 3, kind: input, shape index: {}]   ;;  %s1692_s4 = inlined_call_operand.vmem [shape: f32[2,1,32], index: 4, kind: input, shape index: {}]   ;;  %s1693_s5 = inlined_call_operand.hbm [shape: bf16[2,2,16,32], index: 5, kind: output, shape index: {0}]   ;;  %s1694_s6 = inlined_call_operand.hbm [shape: bf16[2,2,16,32], index: 6, kind: output, shape index: {1}]  }
   0x1   :  { %1712 = sst [smem:[#allocation24_spill]] %s1689_s1 }
   0x2   :  { %1713 = sst [smem:[#allocation25_spill]] %s1690_s2 }
   0x3   :  { %1714 = sst [smem:[#allocation26_spill]] %s1691_s3 }
   0x4   :  { %1715 = sst [smem:[#allocation27_spill]] %s1692_s4 }
   0x5   :  { %1716 = sst [smem:[#allocation28_spill]] %s1693_s5 }
   0x6   :  { %1717 = sst [smem:[#allocation29_spill]] %s1694_s6 }
   0x7   :  { %12 = vsyncpa [#allocation3], 0 }
   0x8   :  { %14 = vsyncpa [#allocation3 + $0x1], 0 }
   0x9   :  { %15 = vsyncpa [#allocation6], 0 }
   0xa   :  { %17 = vsyncpa [#allocation6 + $0x1], 0 }
   0xb   :  { %18 = vsyncpa [#allocation4], 0 }
   0xc   :  { %20 = vsyncpa [#allocation4 + $0x1], 0 }
   0xd   :  { %21 = vsyncpa [#allocation10], 0 }
   0xe   :  { %23 = vsyncpa [#allocation10 + $0x1], 0  ;;  %s1318_s21 = smov 0   ;;  %s1320_s22 = smov 0  }
   0xf   :  { %s1322_s23 = smov 0   ;;  %s1324_s24 = smov 0  }
  0x10   :  { %s1326_s25 = smov 0   ;;  %s1328_s26 = smov 0  }
  0x11   :  { %s1330_s27 = smov 0   ;;  %s1332_s28 = smov 0  }
  0x12   :  { %s1334_s29 = smov 0   ;;  %s1336_s30 = smov 0  }
  0x13   :  { %s1338_s7 = smov 0   ;;  %s1340_s8 = smov 0  }
  0x14   :  { %s1342_s9 = smov 0   ;;  %s1344_s10 = smov 0  }
  0x15 LB: > { %1718 = sst [smem:[#allocation15_spill]] %s1250_s29  ;;  %s1387_s11 = sadd.s32 4294967295, %s1270_s10   ;;  %s1270_s10 = sphi %s1344_s10, %s29_s10   ;;  %s1266_s9 = sphi %s1342_s9, %s1760_s9   ;;  %s1262_s8 = sphi %s1340_s8, %s1759_s8   ;;  %s1258_s7 = sphi %s1338_s7, %s1769_s7   ;;  %s1254_s30 = sphi %s1336_s30, %s1757_s30   ;;  %s1250_s29 = sphi %s1334_s29, %s1756_s29   ;;  %s1246_s28 = sphi %s1332_s28, %s1768_s28   ;;  %s1242_s27 = sphi %s1330_s27, %s1767_s27   ;;  %s1238_s26 = sphi %s1328_s26, %s1766_s26   ;;  %s1234_s25 = sphi %s1326_s25, %s1765_s25   ;;  %s1230_s24 = sphi %s1324_s24, %s1764_s24   ;;  %s1226_s23 = sphi %s1322_s23, %s1763_s23   ;;  %s1222_s22 = sphi %s1320_s22, %s1762_s22   ;;  %s1218_s21 = sphi %s1318_s21, %s1761_s21  }
  0x16   : > { %1719 = sst [smem:[#allocation16_spill]] %s1254_s30  ;;  %p56_p0 = scmp.eq.s32.totalorder %s1270_s10, 0 }
  0x17   : > { %1720 = sst [smem:[#allocation17_spill]] %s1258_s7  ;;  %p62_p1 = scmp.eq.s32.totalorder %s1387_s11, 0 }
  0x18   : > { %1721 = sst [smem:[#allocation18_spill]] %s1262_s8  ;;  %p81_p2 = scmp.ne.s32.totalorder %s1238_s26, %s1234_s25 }
  0x19   : > { %1722 = sst [smem:[#allocation19_spill]] %s1266_s9  ;;  %p87_p3 = scmp.ne.s32.totalorder %s1234_s25, %s1230_s24 }
  0x1a   : > { %p83_p4 = por %p81_p2, %p56_p0  ;;  %p1702_p6 = scmp.lt.s32.totalorder %s1270_s10, 4 }
  0x1b   : > { %p1400_p5 = por %p87_p3, %p62_p1  ;;  %s266_s15 = sand.u32 1, %s1270_s10  }
  0x1c   : > { %s268_s16 = sand.u32 1, %s1238_s26   ;;  %s828_s18 = sshll.u32 %s1266_s9, 8 }
  0x1d   : > { %s1723_s14 = scalar_select %p1400_p5, 1, 0 }
  0x1e   : > { %s1407_s17 = sshll.u32 %s268_s16, 4  ;;  %s1725_s1 = sld [smem:[#allocation24_spill]] }
  0x1f   : > { %1724 = sst [smem:[#allocation20_spill]] %s1723_s14  ;;  %s270_s13 = scalar_lea.vmem [#allocation5], %s1407_s17 }
  0x20   : > { %s277_s24 = sshll.u32 %s270_s13, 4  ;;  %p1416_p7 = pnand %p1702_p6, %p83_p4  ;;  %s278_s24 = int_to_ptr.vmem [resolvable:$true] %s277_s24 }
  0x21   : > { %p191_p8 = scmp.eq.s32.totalorder %s1387_s11, 3  ;;  %s1727_s3 = sld [smem:[#allocation26_spill]] }
  0x22   : > { %s1426_s2 = scalar_lea.sflag [#allocation6], %s266_s15  ;;  %p1697_p9 = pneg %p1416_p7 }
  0x23   : > { %s1021_s19 = scalar_lea.vmem %s278_s24, 256  ;;  %s1272_s13 = smov [#allocation5]  }
  0x24   : > { %s276_s12 = scalar_lea.hbm %s1725_s1, %s828_s18  ;;  %p1022_p10 = scmp.ne.s32.totalorder %s278_s24, %s1021_s19 }
  0x25   : > { %s1026_s20 = sshll.u32 %s1272_s13, 4  ;;  %s1027_s20 = int_to_ptr.vmem [resolvable:$false] %s1026_s20 }
  0x26   : > { %p1024_p11 = pnand %p1022_p10, %p1697_p9  ;;  %s1028_s1 = scalar_lea.vmem %s1027_s20, 512 }
  0x27   : > { %s1424_s4 = scalar_lea.hbm %s1727_s3, %s828_s18  ;;  %p1029_p13 = scmp.lt.s32.totalorder %s278_s24, %s1027_s20 }
  0x28   : > { %p1025_p12 = pneg %p1024_p11  ;;  %p1030_p2 = scmp.lt.s32.totalorder %s1028_s1, %s1021_s19 }
  0x2a   : > { %p1031_p3 = por %p1030_p2, %p1029_p13 }
  0x2c   : > { %p1032_p4 = pnand %p1031_p3, %p1025_p12 }
  0x2e   : > { %1035 = shalt.err (!%p1032_p4)
}
  0x2f   : > { %s1698_s5 = smov 64   ;;  %s1700_s1 = smov 4  }
  0x30   : > { %872 = dma.hbm_to_vmem [thread:$0]  (!%p1416_p7), %s276_s12, 256, %s278_s24, %s1426_s2, %s1698_s5, %s1698_s5, %s1700_s1  }
  0x31   : > { %s297_s15 = scalar_lea.vmem [#allocation7], %s1407_s17  ;;  %p798_p10 = scmp.ge.s32.totalorder %s1270_s10, 1 }
  0x32   : > { %s1440_s18 = sshll.u32 %s297_s15, 4  ;;  %p318_p11 = scmp.lt.s32.totalorder %s1270_s10, 5  ;;  %s1518_s18 = int_to_ptr.vmem [resolvable:$true] %s1440_s18 }
  0x33   : > { %s786_s19 = sadd.s32 4294967294, %s1270_s10   ;;  %s38_s13 = sadd.s32 1, %s1262_s8 }
  0x34   : > { %p1444_p12 = pnand %p798_p10, %p318_p11  ;;  %p39_p13 = scmp.ge.s32.totalorder %s38_s13, 2 }
  0x35   : > { %s48_s20 = sadd.s32 1, %s1250_s29  ;;  %p55_p2 = scmp.ne.s32.totalorder %s1250_s29, %s1246_s28 }
  0x36   : > { %p61_p3 = scmp.ne.s32.totalorder %s1246_s28, %s1242_s27  ;;  %s1771_s13 = smov (%p39_p13, %s38_s13), 0 }
  0x37   : > { %1729 = sst [smem:[#allocation21_spill]] %s1771_s13  ;;  %s1730_s12 = sadd.s32 1, %s1266_s9 }
  0x38   : > { %s1773_s12 = smov (!%p39_p13, %s1730_s12), %s1266_s9  ;;  %s45_s17 = ssub.s32 %s1262_s8, %s1771_s13 }
  0x39   : > { %p1464_p4 = por %p56_p0, %p55_p2  ;;  %p43_p10 = scmp.ge.s32.totalorder %s1773_s12, 2 }
  0x3a   : > { %p46_p11 = scmp.eq.s32.totalorder %s45_s17, 0  ;;  %p1470_p9 = por %p62_p1, %p61_p3 }
  0x3b   : > { %s180_s15 = sadd.s32 1, %s1226_s23  ;;  %s1775_s12 = smov (%p43_p10, %s1773_s12), 0 }
  0x3c   : > { %1733 = sst [smem:[#allocation22_spill]] %s1775_s12  ;;  %s71_s1 = ssub.s32 %s1266_s9, %s1775_s12 }
  0x3d   : > { %s1478_s5 = scalar_select %p46_p11, %s1250_s29, %s48_s20  }
  0x3e   : > { %p190_p0 = scmp.ne.s32.totalorder %s1226_s23, %s1222_s22  ;;  %p72_p13 = scmp.eq.s32.totalorder %s71_s1, 0 }
  0x3f   : > { %1734 = sst [smem:[#allocation23_spill]] %s1478_s5  ;;  %s177_s3 = sor.u32 %s71_s1, %s45_s17 }
  0x40   : > { %p178_p2 = scmp.eq.s32.totalorder %s177_s3, 0  ;;  %p1486_p6 = por %p191_p8, %p190_p0 }
  0x41   : > { %s1736_s30 = sadd.s32 1, %s1238_s26  ;;  %p196_p1 = scmp.ne.s32.totalorder %s1222_s22, %s1218_s21 }
  0x42   : > { %s1735_s13 = scalar_select %p1486_p6, 1, 0 }
  0x43   : > { %s1493_s7 = scalar_select %p72_p13, %s1238_s26, %s1736_s30  }
  0x44   : > { %s1496_s14 = scalar_select %p178_p2, %s1226_s23, %s180_s15  }
  0x45   : > { %p197_p3 = scmp.eq.s32.totalorder %s786_s19, 3  ;;  %s245_s20 = sand.u32 1, %s1250_s29  }
  0x46   : > { %s827_s5 = sshll.u32 %s1262_s8, 7  ;;  %s789_s1 = sshll.u32 %s245_s20, 3 }
  0x47   : > { %p1502_p10 = por %p197_p3, %p196_p1  ;;  %s255_s9 = scalar_lea.hbm %s1688_s0, %s827_s5 }
  0x48   : > { %p1738_p8 = scmp.lt.s32.totalorder %s1270_s10, 4  ;;  %s249_s19 = scalar_lea.vmem [#allocation2], %s789_s1 }
  0x49   : > { %s1737_s12 = scalar_select %p1502_p10, 1, 0 }
  0x4a   : > { %p1513_p11 = pnand %p1738_p8, %p1464_p4  ;;  %s256_s15 = sshll.u32 %s249_s19, 4  ;;  %s257_s15 = int_to_ptr.vmem [resolvable:$true] %s256_s15 }
  0x4b   : > { %s246_s8 = scalar_lea.sflag [#allocation3], %s245_s20  ;;  %s1049_s29 = scalar_lea.vmem %s257_s15, 128 }
  0x4c   : > { %p1038_p0 = pneg %p1513_p11  ;;  %p1050_p13 = scmp.ne.s32.totalorder %s257_s15, %s1049_s29 }
  0x4d   : > { %s1275_s5 = smov [#allocation2]  }
  0x4e   : > { %p1052_p2 = pnand %p1050_p13, %p1038_p0  ;;  %s1054_s24 = sshll.u32 %s1275_s5, 4  ;;  %s1055_s24 = int_to_ptr.vmem [resolvable:$false] %s1054_s24 }
  0x4f   : > { %s1056_s3 = scalar_lea.vmem %s1055_s24, 256  ;;  %p1057_p4 = scmp.lt.s32.totalorder %s257_s15, %s1055_s24 }
  0x50   : > { %p1053_p1 = pneg %p1052_p2  ;;  %p1058_p3 = scmp.lt.s32.totalorder %s1056_s3, %s1049_s29 }
  0x52   : > { %p1059_p8 = por %p1058_p3, %p1057_p4 }
  0x54   : > { %p1060_p10 = pnand %p1059_p8, %p1053_p1 }
  0x56   : > { %1063 = shalt.err (!%p1060_p10)
}
  0x57   : > { %s1740_s1 = smov 4   ;;  %s1741_s17 = smov 64  }
  0x58   : > { %869 = dma.hbm_to_vmem [thread:$0]  (!%p1513_p11), %s255_s9, 128, %s257_s15, %s246_s8, %s1741_s17, %s1741_s17, %s1740_s1  }
  0x59   : > { %s1077_s20 = scalar_lea.vmem %s1518_s18, 256  ;;  %p1742_p13 = pneg %p1416_p7 }
  0x5a   : > { %p1078_p0 = scmp.ne.s32.totalorder %s1518_s18, %s1077_s20  ;;  %s1276_s29 = smov [#allocation7]  }
  0x5b   : > { %s1082_s19 = sshll.u32 %s1276_s29, 4  ;;  %s1083_s19 = int_to_ptr.vmem [resolvable:$false] %s1082_s19 }
  0x5c   : > { %p1080_p2 = pnand %p1078_p0, %p1742_p13  ;;  %s1084_s5 = scalar_lea.vmem %s1083_s19, 512 }
  0x5d   : > { %p1085_p10 = scmp.lt.s32.totalorder %s1518_s18, %s1083_s19  ;;  %p1086_p1 = scmp.lt.s32.totalorder %s1084_s5, %s1077_s20 }
  0x5e   : > { %p1081_p6 = pneg %p1080_p2 }
  0x5f   : > { %p1087_p4 = por %p1086_p1, %p1085_p10 }
  0x61   : > { %p1088_p3 = pnand %p1087_p4, %p1081_p6 }
  0x63   : > { %1091 = shalt.err (!%p1088_p3)
}
  0x64   : > { %875 = dma.hbm_to_vmem [thread:$0]  (!%p1416_p7), %s1424_s4, 256, %s1518_s18, %s1426_s2, %s1741_s17, %s1741_s17, %s1740_s1  }
  0x65   : > { %322 = sbr.rel (%p1444_p12) target bundleno = 358 (0x166), region = 40  ;;  %s324_s8 = sand.u32 (!%p1444_p12), 1, %s1246_s28  }
  0x66   : > { %s799_s9 = sshll.u32 (!%p1444_p12), %s324_s8, 3  ;;  %s325_s30 = scalar_lea.sflag (!%p1444_p12), [#allocation3], %s324_s8 }
  0x67   : > { %s328_s15 = scalar_lea.vmem (!%p1444_p12), [#allocation2], %s799_s9 }
  0x6a   : > { %1201 = dma.done.wait (%p1470_p9), %s325_s30, 128  }
  0x6b   : > { %1203 = vsyncadd (%p1470_p9), %s325_s30, 4294967168  ;;  %s333_s24 = sand.u32 1, %s1387_s11   ;;  %s335_s3 = sand.u32 1, %s1234_s25  }
  0x6c   : > { %s800_s2 = sshll.u32 %s335_s3, 4  ;;  %s334_s4 = scalar_lea.sflag [#allocation6], %s333_s24 }
  0x6d   : > { %s337_s18 = scalar_lea.vmem [#allocation5], %s800_s2 }
  0x6e   : > { %1205 = dma.done.wait (%p1400_p5), %s334_s4, 512  }
  0x6f   : > { %1207 = vsyncadd (%p1400_p5), %s334_s4, 4294966784  ;;  %v1277_v0 = vmov 0.0   ;;  %vm1278_vm0 = vmmov 0   ;;  %s1744_s16 = sld [smem:[#allocation17_spill]]  ;;  %v1003_v1 = vld [vmem:[%s337_s18 + $0x8] sm:$0xff]   ;;  %s346_s27 = scalar_lea.vmem [#allocation7], %s800_s2 }
  0x70   : > { %840 = vmatprep.subr.bf16.mxu0 %v1277_v0  ;;  %848 = vmatprep.subr.bf16.mxu1 %v1277_v0  ;;  %v1004_v2 = vld [vmem:[%s346_s27 + $0x8] sm:$0xff]   ;;  %v1005_v3 = vld [vmem:[%s337_s18] sm:$0xff]   ;;  %s1745_s11 = sld [smem:[#allocation16_spill]]  ;;  %vm433_vm1 = vcmask 261120   ;;  %s1557_s17 = sand.u32 1, %s1222_s22   ;;  %vm550_vm2 = vcmask 257024  }
  0x71   : > { %844 = vmatprep.mubr.msk.bf16.mxu0 %vm1278_vm0, %v1277_v0  ;;  %852 = vmatprep.mubr.msk.bf16.mxu1 %vm1278_vm0, %v1277_v0  ;;  %v1006_v4 = vld [vmem:[%s346_s27] sm:$0xff]   ;;  %v1007_v5 = vld [vmem:[%s328_s15] sm:$0xff]   ;;  %s1746_s19 = sld [smem:[#allocation25_spill]]  ;;  %s802_s3 = sshll.u32 %s1557_s17, 3 }
  0x72   : > { %841 = vmatpush3.bf16.msra.mxu0 %v1003_v1  ;;  %849 = vmatpush3.bf16.msra.mxu1 %v1004_v2  ;;  %s1747_s30 = sld [smem:[#allocation27_spill]]  ;;  %s388_s18 = scalar_lea.vmem [#allocation8], %s802_s3 }
  0x73   : > { %842 = vmatprep.subr.bf16.mxu0 %v1277_v0  ;;  %850 = vmatprep.subr.bf16.mxu1 %v1277_v0  ;;  %s584_s27 = sshll.u32 %s388_s18, 4  ;;  %s395_s20 = scalar_lea.vmem [#allocation9], %s802_s3  ;;  %s1575_s27 = int_to_ptr.vmem [resolvable:$true] %s584_s27 }
  0x74   : > { %s1748_s29 = sld [smem:[#allocation28_spill]]  ;;  %s1092_s3 = scalar_lea.vmem %s1575_s27, 128 }
  0x75   : > { %p396_p5 = scmp.lt.s32.totalorder %s1744_s16, 1  ;;  %s820_s15 = sshll.u32 %s1744_s16, 2 }
  0x76   : > { %843 = vmatpush3.bf16.msra.mxu0 %v1005_v3  ;;  %851 = vmatpush3.bf16.msra.mxu1 %v1006_v4  ;;  %s819_s24 = sshll.u32 %s1745_s11, 1  ;;  %p1093_p6 = scmp.ne.s32.totalorder %s1575_s27, %s1092_s3 }
  0x77   : > { %s397_s1 = scalar_select %p396_p5, %s1744_s16, 1 }
  0x78   : > { %s581_s2 = sadd.s32 %s820_s15, %s819_s24  ;;  %s564_s15 = scalar_lea.sflag [#allocation4], %s1557_s17 }
  0x79   : > { %845 = vmatmul.mubr.msk.bf16.vlgmr.msra.gmra.mxu0 %vm433_vm1, %v1007_v5  ;;  %853 = vmatmul.mubr.msk.bf16.vlgmr.msra.gmra.mxu1 %vm433_vm1, %v1007_v5  ;;  %s398_s5 = scalar_lea.vmem %s1746_s19, %s397_s1  ;;  %s401_s6 = scalar_lea.vmem %s1747_s30, %s397_s1 }
  0x7a   : > { %v804_v6 = vld [vmem:[%s398_s5] ss:$0 sm:$0xff]  ;;  %s821_s4 = sshll.u32 %s581_s2, 6  ;;  %s602_s1 = sshll.u32 %s395_s20, 4  ;;  %s1582_s1 = int_to_ptr.vmem [resolvable:$true] %s602_s1 }
  0x7b   : > { %v809_v7 = vld [vmem:[%s401_s6] ss:$0 sm:$0xff]  ;;  %s1749_s19 = smov %s1748_s29  ;;  %s1572_s5 = scalar_lea.hbm %s1748_s29, %s821_s4 }
  0x7c   : > { %s1750_s30 = sld [smem:[#allocation29_spill]]  ;;  %p1752_p7 = scmp.ne.s32.totalorder %s1735_s13, 0 }
  0x7d   : > { %s1279_s2 = smov [#allocation8]  }
  0x7e   : > { %p1094_p9 = pnand %p1093_p6, %p1752_p7  ;;  %s1096_s16 = sshll.u32 %s1279_s2, 4  ;;  %s1097_s16 = int_to_ptr.vmem [resolvable:$false] %s1096_s16 }
  0x7f   : > { %s1098_s11 = scalar_lea.vmem %s1097_s16, 256  ;;  %p1099_p11 = scmp.lt.s32.totalorder %s1575_s27, %s1097_s16 }
  0x80   : > { %p1095_p12 = pneg %p1094_p9  ;;  %p1100_p8 = scmp.lt.s32.totalorder %s1098_s11, %s1092_s3 }
  0x82   : > { %s1751_s6 = smov %s1750_s30  ;;  %s1580_s24 = scalar_lea.hbm %s1750_s30, %s821_s4 }
  0x83   : > { %p1101_p0 = por %p1100_p8, %p1099_p11 }
  0x85   : > { %p1102_p13 = pnand %p1101_p0, %p1095_p12 }
 0x139   : > { %v471_v8 = vpop.f32.mrf.mxu0  ;;  %v535_v10 = vpop.f32.mrf.mxu1 }
 0x13a   : > { %v472_v9 = vadd.f32 %v804_v6, %v471_v8  ;;  %v536_v11 = vadd.f32 %v809_v7, %v535_v10 }
 0x13b   : > { %v846_v12 = vpop.f32.mrf.mxu0  ;;  %v854_v14 = vpop.f32.mrf.mxu1 }
 0x13c   : > { %v830_v13 = vpack.c.bf16 %v472_v9, %v472_v9  ;;  %v832_v15 = vpack.c.bf16 %v536_v11, %v536_v11 }
 0x13d   : > { %v474_v16 = vpop.f32.mrf.mxu0  ;;  %v538_v18 = vpop.f32.mrf.mxu1 }
 0x13e   : > { %551 = vst.msk [vmem:[%s388_s18] sm:$0xf] %vm550_vm2, %v830_v13  ;;  %v475_v17 = vadd.f32 %v804_v6, %v474_v16  ;;  %561 = vst.msk [vmem:[%s395_s20] sm:$0xf] %vm550_vm2, %v832_v15  ;;  %v539_v19 = vadd.f32 %v809_v7, %v538_v18 }
 0x13f   : > { %v847_v20 = vpop.f32.mrf.mxu0  ;;  %v855_v22 = vpop.f32.mrf.mxu1 }
 0x140   : > { %v831_v21 = vpack.c.bf16 %v475_v17, %v475_v17  ;;  %v833_v23 = vpack.c.bf16 %v539_v19, %v539_v19 }
 0x142   : > { %552 = vst.msk [vmem:[%s388_s18 + $0x4] sm:$0xf] %vm550_vm2, %v831_v21  ;;  %562 = vst.msk [vmem:[%s395_s20 + $0x4] sm:$0xf] %vm550_vm2, %v833_v23 }
 0x143   : > { %1105 = shalt.err (!%p1102_p13)
}
 0x144   : > { %s1106_s4 = scalar_lea.hbm %s1572_s5, 128  ;;  %s1110_s29 = scalar_lea.hbm %s1749_s19, 512 }
 0x145   : > { %p1107_p2 = scmp.ne.s32.totalorder %s1572_s5, %s1106_s4  ;;  %p1111_p4 = scmp.lt.s32.totalorder %s1572_s5, %s1749_s19 }
 0x146   : > { %p1112_p3 = scmp.lt.s32.totalorder %s1110_s29, %s1106_s4 }
 0x147   : > { %p1108_p10 = pnand %p1107_p2, %p1752_p7 }
 0x148   : > { %p1113_p5 = por %p1112_p3, %p1111_p4 }
 0x149   : > { %p1109_p1 = pneg %p1108_p10 }
 0x14b   : > { %p1114_p6 = pnand %p1113_p5, %p1109_p1 }
 0x14d   : > { %1117 = shalt.err (!%p1114_p6)
}
 0x14e   : > { %s1280_s30 = smov 64   ;;  %s1281_s3 = smov 4  }
 0x14f   : > { %862 = dma.vmem_to_hbm [thread:$0]  (%p1752_p7), %s1575_s27, 128, %s1572_s5, %s564_s15, %s1280_s30, %s1280_s30, %s1281_s3  }
 0x150   : > { %s569_s2 = scalar_lea.sflag [#allocation10], %s1557_s17  ;;  %s1118_s16 = scalar_lea.vmem %s1582_s1, 128 }
 0x151   : > { %p1119_p9 = scmp.ne.s32.totalorder %s1582_s1, %s1118_s16  ;;  %s1282_s11 = smov [#allocation9]  }
 0x152   : > { %s1122_s4 = sshll.u32 %s1282_s11, 4  ;;  %s1123_s4 = int_to_ptr.vmem [resolvable:$false] %s1122_s4 }
 0x153   : > { %p1120_p12 = pnand %p1119_p9, %p1752_p7  ;;  %s1124_s18 = scalar_lea.vmem %s1123_s4, 256 }
 0x154   : > { %p1125_p8 = scmp.lt.s32.totalorder %s1582_s1, %s1123_s4  ;;  %p1126_p0 = scmp.lt.s32.totalorder %s1124_s18, %s1118_s16 }
 0x155   : > { %p1121_p11 = pneg %p1120_p12 }
 0x156   : > { %p1127_p13 = por %p1126_p0, %p1125_p8 }
 0x158   : > { %p1128_p2 = pnand %p1127_p13, %p1121_p11 }
 0x15a   : > { %1131 = shalt.err (!%p1128_p2)
}
 0x15b   : > { %s1132_s27 = scalar_lea.hbm %s1580_s24, 128  ;;  %s1136_s15 = scalar_lea.hbm %s1751_s6, 512 }
 0x15c   : > { %p1133_p10 = scmp.ne.s32.totalorder %s1580_s24, %s1132_s27  ;;  %p1137_p3 = scmp.lt.s32.totalorder %s1580_s24, %s1751_s6 }
 0x15d   : > { %p1138_p5 = scmp.lt.s32.totalorder %s1136_s15, %s1132_s27 }
 0x15e   : > { %p1134_p1 = pnand %p1133_p10, %p1752_p7 }
 0x15f   : > { %p1139_p6 = por %p1138_p5, %p1137_p3 }
 0x160   : > { %p1135_p4 = pneg %p1134_p1 }
 0x162   : > { %p1140_p9 = pnand %p1139_p6, %p1135_p4 }
 0x164   : > { %1143 = shalt.err (!%p1140_p9)
}
 0x165   : > { %863 = dma.vmem_to_hbm [thread:$0]  (%p1752_p7), %s1582_s1, 128, %s1580_s24, %s569_s2, %s1280_s30, %s1280_s30, %s1281_s3  }
 0x166 PF: > { %p884_p12 = scmp.ge.s32.totalorder %s1270_s10, 2  ;;  %s617_s8 = sand.u32 1, %s1218_s21  }
 0x167   : > { %p1753_p11 = scmp.ne.s32.totalorder %s1737_s12, 0  ;;  %s618_s9 = scalar_lea.sflag [#allocation4], %s617_s8 }
 0x169   : > { %p877_p8 = pnand %p884_p12, %p1753_p11 }
 0x16b   : > { %p878_p0 = pneg %p877_p8 }
 0x16d   : > { %1209 = dma.done.wait (%p878_p0), %s618_s9, 128  }
 0x16e   : > { %1211 = vsyncadd (%p878_p0), %s618_s9, 4294967168  ;;  %s627_s16 = scalar_lea.sflag [#allocation10], %s617_s8 }
 0x16f   : > { %1213 = dma.done.wait (%p878_p0), %s627_s16, 128  }
 0x170   : > { %1215 = vsyncadd (%p878_p0), %s627_s16, 4294967168  ;;  %s29_s10 = sadd.s32 1, %s1270_s10   ;;  %s1755_s12 = sld [smem:[#allocation15_spill]] }
 0x171   : > { %p1641_p13 = scmp.ge.s32.totalorder %s29_s10, 6   ;;  %s1756_s29 = sld [smem:[#allocation23_spill]] }
 0x172   : > { %s1757_s30 = sld [smem:[#allocation18_spill]]  ;;  %s1761_s21 = smov %s1222_s22 }
 0x173   : > { %s1758_s1 = sld [smem:[#allocation19_spill]]  ;;  %s1762_s22 = smov %s1226_s23 }
 0x174   : > { %s1759_s8 = sld [smem:[#allocation21_spill]]  ;;  %s1763_s23 = smov %s1496_s14 }
 0x175   : > { %s1760_s9 = sld [smem:[#allocation22_spill]]  ;;  %s1764_s24 = smov %s1234_s25 }
 0x176   : > { %s1765_s25 = smov %s1238_s26  ;;  %s1766_s26 = smov %s1493_s7 }
 0x177   : > { %s1767_s27 = smov %s1246_s28  ;;  %s1768_s28 = smov %s1755_s12 }
 0x178   :  { %28 = sbr.rel (!%p1641_p13) target bundleno = 21 (0x15), region = 132 }
 0x179   : > { %s1769_s7 = smov %s1758_s1 }
 0x17d   :  { %632 = vsyncpa [#allocation3], 1 }
 0x17e   :  { %634 = vsyncpa [#allocation3 + $0x1], 1 }
 0x17f   :  { %635 = vsyncpa [#allocation6], 1 }
 0x180   :  { %637 = vsyncpa [#allocation6 + $0x1], 1 }
 0x181   :  { %638 = vsyncpa [#allocation4], 1 }
 0x182   :  { %640 = vsyncpa [#allocation4 + $0x1], 1 }
 0x183   :  { %641 = vsyncpa [#allocation10], 1 }
 0x184   :  { %643 = vsyncpa [#allocation10 + $0x1], 1 }

</bundles_post_ra>
